<compile_context>
chip_gen: v7x
topology: tpu7x:2x2x1
jax: 0.10.0
libtpu: 0.0.40
codegen_flags: <defaults>
</compile_context>

<pallas_src>
import functools

import jax
import jax.numpy as jnp
from jax.experimental import pallas as pl
from jax.experimental.pallas import tpu as pltpu


def _round_up(x, m):
    return ((x + m - 1) // m) * m


# ----------------------------------------------------------------------------
# Kernel
# ----------------------------------------------------------------------------
def _encoder_kernel(x_ref, emb_ref, *refs, n_layers, emb_slices, out_slice,
                    has_emb):
    """Fused Encoder forward over one batch tile.

    refs = (packed params..., out_ref) in the order:
      [w_emb, b_emb]                  (only if has_emb)
      w0, b0                          (layer-0 fused ind+cate)
      for l in 1..L-1: w_big_l, b_big_l
    """
    o_ref = refs[-1]
    params = refs[:-1]

    p = 0
    emb_all = None
    if has_emb:
        # Single fused matmul for every emb-dependent term (side contributions
        # of layers 1..L-1 plus the final projected-emb output columns).
        w_emb = params[p][...]
        b_emb = params[p + 1][...]
        p += 2
        emb_all = (jnp.dot(emb_ref[...], w_emb,
                           preferred_element_type=jnp.float32) + b_emb)

    # Layer 0: z == h == x_t, so one fused matmul produces [z0 | hc0].
    w0 = params[p][...]
    b0 = params[p + 1][...]
    p += 2
    t = jnp.tanh(jnp.dot(x_ref[...], w0,
                         preferred_element_type=jnp.float32) + b0)

    # Layers 1..L-1: block-diagonal fused matmul on [z | hc]; the projected-emb
    # contribution was pre-composed into emb_all, so it enters as a slice-add.
    for idx in range(n_layers - 1):
        w_big = params[p][...]
        b_big = params[p + 1][...]
        p += 2
        lo, hi = emb_slices[idx]
        pre = (jnp.dot(t.astype(w_big.dtype), w_big,
                       preferred_element_type=jnp.float32)
               + emb_all[:, lo:hi] + b_big)
        t = jnp.tanh(pre)

    # Final output = [z_L | hc_L | proj_L] at its exact width (no lane padding).
    if out_slice is not None:
        last_proj = emb_all[:, out_slice[0]:out_slice[1]]
    else:
        # Passthrough emb (already in compute dtype; may be bf16-rounded).
        last_proj = emb_ref[...].astype(jnp.float32)
    o_ref[...] = jnp.concatenate([t, last_proj], axis=-1).astype(o_ref.dtype)


# ----------------------------------------------------------------------------
# Host-side weight packing
# ----------------------------------------------------------------------------
def pack_encoder_params(layer_params, use_proj, cond_dim):
    """Pack the per-layer PyTorch-style weights into the fused kernel layout."""
    n_layers = len(layer_params)
    wz = [p["w_ind"].shape[1] for p in layer_params]      # dims[l]//2
    whc = [p["w_cate"].shape[1] for p in layer_params]    # dims[l]//2 - dims[l]//4
    pw = [layer_params[l]["w_proj"].shape[1] if use_proj[l] else cond_dim
          for l in range(n_layers)]                       # projected-emb width
    f32 = jnp.float32

    # Layer 0: both ind and cate see x_t -> one fused weight matrix.
    w0 = jnp.concatenate([layer_params[0]["w_ind"],
                          layer_params[0]["w_cate"]], axis=1)
    b0 = jnp.concatenate([layer_params[0]["b_ind"],
                          layer_params[0]["b_cate"]], axis=1).astype(f32)

    # Deeper layers: block-diagonal [w_ind | w_cate_top]; the w_cate bottom rows
    # (acting on the previous projected emb, which is affine in emb_cate) are
    # composed on the host into a single fused emb matmul.
    deeper = []                 # (w_big, b_big) per layer >= 1
    emb_w_cols, emb_b_cols = [], []
    emb_slices = []             # per layer 1..L-1 : (lo, hi) column slice
    off = 0
    for l in range(1, n_layers):
        wi = layer_params[l]["w_ind"]          # (wz[l-1], wz[l])
        wc = layer_params[l]["w_cate"]         # (whc[l-1] + pw[l-1], whc[l])
        assert wc.shape[0] == whc[l - 1] + pw[l - 1], "inconsistent encoder dims"
        wc_top = wc[: whc[l - 1], :]
        wc_bot = wc[whc[l - 1]:, :]

        w_big = jnp.concatenate(
            [jnp.concatenate([wi, jnp.zeros((wz[l - 1], whc[l]), wi.dtype)], axis=1),
             jnp.concatenate([jnp.zeros((whc[l - 1], wz[l]), wi.dtype), wc_top], axis=1)],
            axis=0)
        b_big = jnp.concatenate([layer_params[l]["b_ind"],
                                 layer_params[l]["b_cate"]], axis=1).astype(f32)

        # Raw side matrix acting on prev_proj: (pw[l-1], wz[l] + whc[l])
        w_side_raw = jnp.concatenate(
            [jnp.zeros((pw[l - 1], wz[l]), wc.dtype), wc_bot], axis=1).astype(f32)
        if use_proj[l - 1]:
            # prev_proj = emb @ W_proj + b_proj  ->  compose (in f32, on host).
            w_side = layer_params[l - 1]["w_proj"].astype(f32) @ w_side_raw
            b_side = layer_params[l - 1]["b_proj"].astype(f32) @ w_side_raw
        else:
            w_side = w_side_raw
            b_side = jnp.zeros((1, w_side_raw.shape[1]), f32)

        width = wz[l] + whc[l]
        emb_w_cols.append(w_side)
        emb_b_cols.append(b_side)
        emb_slices.append((off, off + width))
        off += width
        deeper.append((w_big, b_big))

    # Last layer's projection appears verbatim in the output.
    if use_proj[-1]:
        emb_w_cols.append(layer_params[-1]["w_proj"].astype(f32))
        emb_b_cols.append(layer_params[-1]["b_proj"].astype(f32))
        out_slice = (off, off + pw[-1])
        off += pw[-1]
    else:
        out_slice = None

    has_emb = bool(emb_w_cols)
    w_emb = jnp.concatenate(emb_w_cols, axis=1) if has_emb else None
    b_emb = jnp.concatenate(emb_b_cols, axis=1) if has_emb else None

    out_width = wz[-1] + whc[-1] + pw[-1]
    return dict(w_emb=w_emb, b_emb=b_emb, w0=w0, b0=b0, deeper=deeper,
                emb_slices=tuple(emb_slices), out_slice=out_slice,
                has_emb=has_emb, n_layers=n_layers, out_width=out_width)


# ----------------------------------------------------------------------------
# Wrapper
# ----------------------------------------------------------------------------
def encoder_forward(x_t, emb_cate, packed, *, block_batch=1024,
                    compute_dtype=jnp.float32):
    batch, d_in = x_t.shape
    cond = emb_cate.shape[1]
    out_width = packed["out_width"]
    out_dtype = x_t.dtype
    cdt = jnp.dtype(compute_dtype)

    # Batch tile: multiple of 16 sublanes (safe for bf16 packing).  Cap at
    # ceil(batch/2) so large batches always give >= 2 grid steps (both v7x TCs
    # get work under dimension_semantics=("parallel",)).
    MIN_TILE = 16
    tb = _round_up(min(block_batch, max(batch, MIN_TILE)), MIN_TILE)
    if batch > MIN_TILE:
        tb = min(tb, _round_up(-(-batch // 2), MIN_TILE))
    padded_batch = _round_up(batch, tb)

    # Host-side cast to the compute dtype: halves input DMA bytes in bf16 mode
    # and removes per-tile VPU casts.  Biases stay f32 (bias-add/tanh in f32).
    x_t = x_t.astype(cdt)
    emb_cate = emb_cate.astype(cdt)
    if padded_batch != batch:
        x_t = jnp.pad(x_t, ((0, padded_batch - batch), (0, 0)))
        emb_cate = jnp.pad(emb_cate, ((0, padded_batch - batch), (0, 0)))

    flat_params = []
    if packed["has_emb"]:
        flat_params += [packed["w_emb"].astype(cdt),
                        packed["b_emb"].astype(jnp.float32)]
    flat_params += [packed["w0"].astype(cdt), packed["b0"].astype(jnp.float32)]
    for w_big, b_big in packed["deeper"]:
        flat_params += [w_big.astype(cdt), b_big.astype(jnp.float32)]

    kernel = functools.partial(
        _encoder_kernel,
        n_layers=packed["n_layers"],
        emb_slices=packed["emb_slices"],
        out_slice=packed["out_slice"],
        has_emb=packed["has_emb"],
    )

    grid = (padded_batch // tb,)
    in_specs = [pl.BlockSpec((tb, d_in), lambda i: (i, 0)),
                pl.BlockSpec((tb, cond), lambda i: (i, 0))]
    # Weights/biases: full-extent blocks with a constant index_map -> DMA'd
    # once and kept resident in VMEM across all batch-grid steps.
    in_specs += [pl.BlockSpec(p.shape, lambda i: (0, 0)) for p in flat_params]
    # Exact-width output block (no lane padding, no post-kernel lane slice).
    out_specs = pl.BlockSpec((tb, out_width), lambda i: (i, 0))

    out = pl.pallas_call(
        kernel,
        out_shape=jax.ShapeDtypeStruct((padded_batch, out_width), out_dtype),
        grid=grid,
        in_specs=in_specs,
        out_specs=out_specs,
        compiler_params=pltpu.CompilerParams(
            dimension_semantics=("parallel",),      # batch grid -> megacore on v7x
            vmem_limit_bytes=32 * 1024 * 1024,
        ),
    )(x_t, emb_cate, *flat_params)

    return out if padded_batch == batch else out[:batch]


# ----------------------------------------------------------------------------
# Pure-JAX reference (mirrors the PyTorch forward; optional bf16 operands)
# ----------------------------------------------------------------------------
def encoder_reference(x_t, emb_cate, layer_params, use_proj,
                      compute_dtype=jnp.float32):
    cdt = compute_dtype

    def mm(a, w):
        return jnp.dot(a.astype(cdt), w.astype(cdt),
                       preferred_element_type=jnp.float32)

    z = x_t
    h = x_t
    for l, prm in enumerate(layer_params):
        z = jnp.tanh(mm(z, prm["w_ind"]) + prm["b_ind"])
        hc = jnp.tanh(mm(h, prm["w_cate"]) + prm["b_cate"])
        if use_proj[l]:
            proj = mm(emb_cate, prm["w_proj"]) + prm["b_proj"]
        else:
            proj = emb_cate
        half = z.shape[-1]
        latent = jnp.concatenate([z, hc, proj], axis=-1)
        z = latent[:, :half]
        h = latent[:, half:]
    return jnp.concatenate([z, h], axis=-1)


# ----------------------------------------------------------------------------
# Parameter construction (deterministic, mirrors Encoder.__init__ shapes)
# ----------------------------------------------------------------------------
def build_encoder_params(key, n_item, dims, dim_step, cond_dim, dtype=jnp.float32):
    ind_in_dims = [n_item + dim_step] + [d // 2 for d in dims[:-1]]
    ind_out_dims = [d // 2 for d in dims]
    cate_in_dims = [n_item + dim_step] + [d // 2 for d in dims[:-1]]
    cate_out_dims = [d // 2 - d // 4 for d in dims]
    proj_out_dims = [d // 4 for d in dims]   # proj_layer[idx]: Linear(cond_dim, dims[idx]//4)

    use_proj = [co != cond_dim for co in cate_out_dims]

    params = []
    for layer in range(len(dims)):
        key, k1, k2, k3, k4, k5, k6 = jax.random.split(key, 7)
        prm = {
            # stored pre-transposed: (d_in, d_out) so the kernel does x @ W
            "w_ind": 0.1 * jax.random.normal(k1, (ind_in_dims[layer], ind_out_dims[layer]), dtype),
            "b_ind": 0.1 * jax.random.normal(k2, (1, ind_out_dims[layer]), dtype),
            "w_cate": 0.1 * jax.random.normal(k3, (cate_in_dims[layer], cate_out_dims[layer]), dtype),
            "b_cate": 0.1 * jax.random.normal(k4, (1, cate_out_dims[layer]), dtype),
        }
        if use_proj[layer]:
            prm["w_proj"] = 0.1 * jax.random.normal(k5, (cond_dim, proj_out_dims[layer]), dtype)
            prm["b_proj"] = 0.1 * jax.random.normal(k6, (1, proj_out_dims[layer]), dtype)
        params.append(prm)

    last_proj_w = proj_out_dims[-1] if use_proj[-1] else cond_dim
    out_width = ind_out_dims[-1] + cate_out_dims[-1] + last_proj_w
    return params, use_proj, out_width


# ----------------------------------------------------------------------------
if __name__ == "__main__":
    n_item = 24
    dim_step = 8          # x_t width = n_item + dim_step = 32
    dims = [64, 48, 32]   # three layers: exercises passthrough, projection and
                          # host-side composition of intermediate projections
    cond_dim = 16         # layer 0: cate_out == cond_dim -> no projection

    key = jax.random.PRNGKey(0)
    key, kx, ke, kp, kx2, ke2 = jax.random.split(key, 6)

    layer_params, use_proj, out_width = build_encoder_params(
        kp, n_item, dims, dim_step, cond_dim)
    packed = pack_encoder_params(layer_params, use_proj, cond_dim)
    assert packed["out_width"] == out_width

    # --- small batch (module demo size), f32 compute: tight semantic check ---
    batch = 2
    x_t = jax.random.normal(kx, (batch, n_item + dim_step), jnp.float32)
    emb_cate = jax.random.normal(ke, (batch, cond_dim), jnp.float32)

    out = jax.block_until_ready(
        encoder_forward(x_t, emb_cate, packed, compute_dtype=jnp.float32))
    ref = encoder_reference(x_t, emb_cate, layer_params, use_proj)
    assert out.shape == ref.shape, (out.shape, ref.shape)
    assert jnp.allclose(out, ref, atol=1e-4, rtol=1e-4), (
        float(jnp.max(jnp.abs(out - ref))))

    # --- larger batch, bf16 matmul operands, multi-step pipelined grid -------
    batch2 = 1000     # not a multiple of the tile -> exercises batch padding
    x2 = jax.random.normal(kx2, (batch2, n_item + dim_step), jnp.float32)
    e2 = jax.random.normal(ke2, (batch2, cond_dim), jnp.float32)

    out2 = jax.block_until_ready(
        encoder_forward(x2, e2, packed, block_batch=1024,
                        compute_dtype=jnp.bfloat16))
    ref2_mixed = encoder_reference(x2, e2, layer_params, use_proj,
                                   compute_dtype=jnp.bfloat16)
    ref2_f32 = encoder_reference(x2, e2, layer_params, use_proj)
    assert out2.shape == ref2_f32.shape, (out2.shape, ref2_f32.shape)
    assert jnp.allclose(out2, ref2_mixed, atol=1e-2, rtol=1e-2), (
        float(jnp.max(jnp.abs(out2 - ref2_mixed))))
    assert jnp.allclose(out2, ref2_f32, atol=6e-2, rtol=6e-2), (
        float(jnp.max(jnp.abs(out2 - ref2_f32))))

    print("KERNEL_OK")
</pallas_src>

<mosaic_0001>
module attributes {stable_mosaic.version = 11 : i64} {
  func.func @_encoder_kernel(%arg0: i32, %arg1: memref<16x32xf32, #tpu.memory_space<vmem>>, %arg2: memref<16x16xf32, #tpu.memory_space<vmem>>, %arg3: memref<16x68xf32, #tpu.memory_space<vmem>>, %arg4: memref<1x68xf32, #tpu.memory_space<vmem>>, %arg5: memref<32x48xf32, #tpu.memory_space<vmem>>, %arg6: memref<1x48xf32, #tpu.memory_space<vmem>>, %arg7: memref<48x36xf32, #tpu.memory_space<vmem>>, %arg8: memref<1x36xf32, #tpu.memory_space<vmem>>, %arg9: memref<36x24xf32, #tpu.memory_space<vmem>>, %arg10: memref<1x24xf32, #tpu.memory_space<vmem>>, %arg11: memref<16x32xf32, #tpu.memory_space<vmem>>) attributes {dimension_semantics = [#tpu.dimension_semantics<parallel>], iteration_bounds = array<i64: 1>, scalar_prefetch = 0 : i64, scratch_operands = 0 : i64, tpu.core_type = #tpu.core_type<tc>, window_params = [{transform_indices = @transform_0, window_bounds = array<i64: 16, 32>}, {transform_indices = @transform_1, window_bounds = array<i64: 16, 16>}, {pipeline_mode = #tpu.pipeline_mode<synchronous>, transform_indices = @transform_2, window_bounds = array<i64: 16, 68>}, {pipeline_mode = #tpu.pipeline_mode<synchronous>, transform_indices = @transform_3, window_bounds = array<i64: 1, 68>}, {pipeline_mode = #tpu.pipeline_mode<synchronous>, transform_indices = @transform_4, window_bounds = array<i64: 32, 48>}, {pipeline_mode = #tpu.pipeline_mode<synchronous>, transform_indices = @transform_5, window_bounds = array<i64: 1, 48>}, {pipeline_mode = #tpu.pipeline_mode<synchronous>, transform_indices = @transform_6, window_bounds = array<i64: 48, 36>}, {pipeline_mode = #tpu.pipeline_mode<synchronous>, transform_indices = @transform_7, window_bounds = array<i64: 1, 36>}, {pipeline_mode = #tpu.pipeline_mode<synchronous>, transform_indices = @transform_8, window_bounds = array<i64: 36, 24>}, {pipeline_mode = #tpu.pipeline_mode<synchronous>, transform_indices = @transform_9, window_bounds = array<i64: 1, 24>}, {transform_indices = @transform_10, window_bounds = array<i64: 16, 32>}]} {
    %c0 = arith.constant 0 : index
    %c0_0 = arith.constant 0 : index
    %0 = vector.load %arg3[%c0, %c0_0] : memref<16x68xf32, #tpu.memory_space<vmem>>, vector<16x68xf32>
    %c0_1 = arith.constant 0 : index
    %c0_2 = arith.constant 0 : index
    %1 = vector.load %arg4[%c0_1, %c0_2] : memref<1x68xf32, #tpu.memory_space<vmem>>, vector<1x68xf32>
    %c0_3 = arith.constant 0 : index
    %c0_4 = arith.constant 0 : index
    %2 = vector.load %arg2[%c0_3, %c0_4] : memref<16x16xf32, #tpu.memory_space<vmem>>, vector<16x16xf32>
    %cst = arith.constant dense<0.000000e+00> : vector<16x68xf32>
    %3 = tpu.matmul %2, %0, %cst {dimension_numbers = #tpu.dot_dimension_numbers<[1], [0], [0], [1], [0, 0, 1, 1], [], []>} : vector<16x16xf32>, vector<16x68xf32>, vector<16x68xf32> -> vector<16x68xf32>
    %4 = vector.broadcast %1 : vector<1x68xf32> to vector<16x68xf32>
    %5 = arith.addf %3, %4 : vector<16x68xf32>
    %c0_5 = arith.constant 0 : index
    %c0_6 = arith.constant 0 : index
    %6 = vector.load %arg5[%c0_5, %c0_6] : memref<32x48xf32, #tpu.memory_space<vmem>>, vector<32x48xf32>
    %c0_7 = arith.constant 0 : index
    %c0_8 = arith.constant 0 : index
    %7 = vector.load %arg6[%c0_7, %c0_8] : memref<1x48xf32, #tpu.memory_space<vmem>>, vector<1x48xf32>
    %c0_9 = arith.constant 0 : index
    %c0_10 = arith.constant 0 : index
    %8 = vector.load %arg1[%c0_9, %c0_10] : memref<16x32xf32, #tpu.memory_space<vmem>>, vector<16x32xf32>
    %cst_11 = arith.constant dense<0.000000e+00> : vector<16x48xf32>
    %9 = tpu.matmul %8, %6, %cst_11 {dimension_numbers = #tpu.dot_dimension_numbers<[1], [0], [0], [1], [0, 0, 1, 1], [], []>} : vector<16x32xf32>, vector<32x48xf32>, vector<16x48xf32> -> vector<16x48xf32>
    %10 = vector.broadcast %7 : vector<1x48xf32> to vector<16x48xf32>
    %11 = arith.addf %9, %10 : vector<16x48xf32>
    %12 = math.tanh %11 : vector<16x48xf32>
    %c0_12 = arith.constant 0 : index
    %c0_13 = arith.constant 0 : index
    %13 = vector.load %arg7[%c0_12, %c0_13] : memref<48x36xf32, #tpu.memory_space<vmem>>, vector<48x36xf32>
    %c0_14 = arith.constant 0 : index
    %c0_15 = arith.constant 0 : index
    %14 = vector.load %arg8[%c0_14, %c0_15] : memref<1x36xf32, #tpu.memory_space<vmem>>, vector<1x36xf32>
    %cst_16 = arith.constant dense<0.000000e+00> : vector<16x36xf32>
    %15 = tpu.matmul %12, %13, %cst_16 {dimension_numbers = #tpu.dot_dimension_numbers<[1], [0], [0], [1], [0, 0, 1, 1], [], []>} : vector<16x48xf32>, vector<48x36xf32>, vector<16x36xf32> -> vector<16x36xf32>
    %16 = vector.extract_strided_slice %5 {offsets = [0, 0], sizes = [16, 36], strides = [1, 1]} : vector<16x68xf32> to vector<16x36xf32>
    %17 = arith.addf %15, %16 : vector<16x36xf32>
    %18 = vector.broadcast %14 : vector<1x36xf32> to vector<16x36xf32>
    %19 = arith.addf %17, %18 : vector<16x36xf32>
    %20 = math.tanh %19 : vector<16x36xf32>
    %c0_17 = arith.constant 0 : index
    %c0_18 = arith.constant 0 : index
    %21 = vector.load %arg9[%c0_17, %c0_18] : memref<36x24xf32, #tpu.memory_space<vmem>>, vector<36x24xf32>
    %c0_19 = arith.constant 0 : index
    %c0_20 = arith.constant 0 : index
    %22 = vector.load %arg10[%c0_19, %c0_20] : memref<1x24xf32, #tpu.memory_space<vmem>>, vector<1x24xf32>
    %cst_21 = arith.constant dense<0.000000e+00> : vector<16x24xf32>
    %23 = tpu.matmul %20, %21, %cst_21 {dimension_numbers = #tpu.dot_dimension_numbers<[1], [0], [0], [1], [0, 0, 1, 1], [], []>} : vector<16x36xf32>, vector<36x24xf32>, vector<16x24xf32> -> vector<16x24xf32>
    %24 = vector.extract_strided_slice %5 {offsets = [0, 36], sizes = [16, 24], strides = [1, 1]} : vector<16x68xf32> to vector<16x24xf32>
    %25 = arith.addf %23, %24 : vector<16x24xf32>
    %26 = vector.broadcast %22 : vector<1x24xf32> to vector<16x24xf32>
    %27 = arith.addf %25, %26 : vector<16x24xf32>
    %28 = math.tanh %27 : vector<16x24xf32>
    %29 = vector.extract_strided_slice %5 {offsets = [0, 60], sizes = [16, 8], strides = [1, 1]} : vector<16x68xf32> to vector<16x8xf32>
    %30 = tpu.concatenate %28, %29 in 1 : vector<16x24xf32>, vector<16x8xf32> -> vector<16x32xf32>
    %c0_22 = arith.constant 0 : index
    %c0_23 = arith.constant 0 : index
    %31 = vector.load %arg11[%c0_22, %c0_23] : memref<16x32xf32, #tpu.memory_space<vmem>>, vector<16x32xf32>
    tpu.vector_store %arg11[%c0_22, %c0_23], %30 {strides = array<i32>} : memref<16x32xf32, #tpu.memory_space<vmem>>, vector<16x32xf32>,
    return
  }
  func.func @transform_0(%arg0: i32) -> (i32, i32) {
    %c0_i32 = arith.constant 0 : i32
    %c0_i32_0 = arith.constant 0 : i32
    return %arg0, %c0_i32 : i32, i32
  }
  func.func @transform_1(%arg0: i32) -> (i32, i32) {
    %c0_i32 = arith.constant 0 : i32
    %c0_i32_0 = arith.constant 0 : i32
    return %arg0, %c0_i32 : i32, i32
  }
  func.func @transform_2(%arg0: i32) -> (i32, i32) {
    %c0_i32 = arith.constant 0 : i32
    %c0_i32_0 = arith.constant 0 : i32
    %c0_i32_1 = arith.constant 0 : i32
    return %c0_i32, %c0_i32_0 : i32, i32
  }
  func.func @transform_3(%arg0: i32) -> (i32, i32) {
    %c0_i32 = arith.constant 0 : i32
    %c0_i32_0 = arith.constant 0 : i32
    %c0_i32_1 = arith.constant 0 : i32
    return %c0_i32, %c0_i32_0 : i32, i32
  }
  func.func @transform_4(%arg0: i32) -> (i32, i32) {
    %c0_i32 = arith.constant 0 : i32
    %c0_i32_0 = arith.constant 0 : i32
    %c0_i32_1 = arith.constant 0 : i32
    return %c0_i32, %c0_i32_0 : i32, i32
  }
  func.func @transform_5(%arg0: i32) -> (i32, i32) {
    %c0_i32 = arith.constant 0 : i32
    %c0_i32_0 = arith.constant 0 : i32
    %c0_i32_1 = arith.constant 0 : i32
    return %c0_i32, %c0_i32_0 : i32, i32
  }
  func.func @transform_6(%arg0: i32) -> (i32, i32) {
    %c0_i32 = arith.constant 0 : i32
    %c0_i32_0 = arith.constant 0 : i32
    %c0_i32_1 = arith.constant 0 : i32
    return %c0_i32, %c0_i32_0 : i32, i32
  }
  func.func @transform_7(%arg0: i32) -> (i32, i32) {
    %c0_i32 = arith.constant 0 : i32
    %c0_i32_0 = arith.constant 0 : i32
    %c0_i32_1 = arith.constant 0 : i32
    return %c0_i32, %c0_i32_0 : i32, i32
  }
  func.func @transform_8(%arg0: i32) -> (i32, i32) {
    %c0_i32 = arith.constant 0 : i32
    %c0_i32_0 = arith.constant 0 : i32
    %c0_i32_1 = arith.constant 0 : i32
    return %c0_i32, %c0_i32_0 : i32, i32
  }
  func.func @transform_9(%arg0: i32) -> (i32, i32) {
    %c0_i32 = arith.constant 0 : i32
    %c0_i32_0 = arith.constant 0 : i32
    %c0_i32_1 = arith.constant 0 : i32
    return %c0_i32, %c0_i32_0 : i32, i32
  }
  func.func @transform_10(%arg0: i32) -> (i32, i32) {
    %c0_i32 = arith.constant 0 : i32
    %c0_i32_0 = arith.constant 0 : i32
    return %arg0, %c0_i32 : i32, i32
  }
}

</mosaic_0001>

<bundles_post_ra>
// kernel: tpu_custom_call.1
= control target key start
LH: loop header
LB: loop body
LE: loop exit
PB: predicated region body
PF: predicated region fallthrough
CT: control target
= control target key end

     0   :  { %vm142_vm0 = vcmask 261120   ;;  %vm47_vm1 = vcmask 130048   ;;  %s764_s0 = inlined_call_operand.vmem [shape: f32[16,32], index: 0, kind: input, shape index: {}]   ;;  %s765_s1 = inlined_call_operand.vmem [shape: f32[16,16], index: 1, kind: input, shape index: {}]   ;;  %s766_s2 = inlined_call_operand.vmem [shape: f32[16,68], index: 2, kind: input, shape index: {}]   ;;  %s767_s3 = inlined_call_operand.vmem [shape: f32[1,68], index: 3, kind: input, shape index: {}]   ;;  %s768_s4 = inlined_call_operand.vmem [shape: f32[32,48], index: 4, kind: input, shape index: {}]   ;;  %s769_s5 = inlined_call_operand.vmem [shape: f32[1,48], index: 5, kind: input, shape index: {}]   ;;  %s770_s6 = inlined_call_operand.vmem [shape: f32[48,36], index: 6, kind: input, shape index: {}]   ;;  %s771_s7 = inlined_call_operand.vmem [shape: f32[1,36], index: 7, kind: input, shape index: {}]   ;;  %s772_s8 = inlined_call_operand.vmem [shape: f32[36,24], index: 8, kind: input, shape index: {}]   ;;  %s773_s9 = inlined_call_operand.vmem [shape: f32[1,24], index: 9, kind: input, shape index: {}]   ;;  %s774_s10 = inlined_call_operand.hbm [shape: f32[16,32], index: 10, kind: output, shape index: {}]  }
   0x1   :  { %v129_v0 = vld [vmem:[%s768_s4] sm:$0xff]  ;;  %v130_v1 = vld [vmem:[%s768_s4 + $0x8] sm:$0xff]  ;;  %v131_v2 = vld [vmem:[%s768_s4 + $0x10] sm:$0xff] }
   0x2   :  { %v544_v3 = vpack.c.bf16 %v130_v1, %v129_v0  ;;  %v132_v4 = vld [vmem:[%s768_s4 + $0x18] sm:$0xff]  ;;  %v134_v5 = vld [vmem:[%s764_s0] sm:$0xff]  ;;  %v37_v8 = vld [vmem:[%s766_s2 + $0x8] sm:$0xff] }
   0x3   :  { %v548_v6 = vpack.c.bf16 %v132_v4, %v131_v2  ;;  %509 = vmatprep.mubr.msk.f32.mxu1 %vm142_vm0, %v134_v5  ;;  %v36_v7 = vld [vmem:[%s766_s2] sm:$0xff] }
   0x4   :  { %v39_v9 = vld [vmem:[%s765_s1] sm:$0xff]  ;;  %545 = vmatprep.subr.bf16.mxu1 %v544_v3  ;;  %v540_v10 = vpack.c.bf16 %v37_v8, %v36_v7 }
   0x5   :  { %498 = vmatprep.mubr.msk.f32.mxu0 %vm47_vm1, %v39_v9 }
   0x6   :  { %15 = vsyncpa [#allocation3], 0  ;;  %547 = vmatpush3.bf16.msra.mxu1 %v544_v3  ;;  %541 = vmatprep.subr.bf16.mxu0 %v540_v10  ;;  %v40_v11 = vld [vmem:[%s765_s1 + $0x8] sm:$0xff]  ;;  %v226_v13 = vld [vmem:[%s770_s6] sm:$0xff]  ;;  %vm233_vm2 = vcmask 392192   ;;  %vm346_vm3 = vcmask 1043456  }
   0x7   :  { %549 = vmatprep.subr.bf16.mxu1 %v548_v6  ;;  %543 = vmatpush3.bf16.msra.mxu0 %v540_v10  ;;  %v135_v12 = vld [vmem:[%s764_s0 + $0x8] sm:$0xff]  ;;  %v228_v16 = vld [vmem:[%s770_s6 + $0x10] sm:$0xff]  ;;  %v229_v17 = vld [vmem:[%s770_s6 + $0x18] sm:$0xff]  ;;  %vm339_vm4 = vcmask 293888   ;;  %vm435_vm5 = vcmask 195584  }
   0x8   :  { %v227_v14 = vld [vmem:[%s770_s6 + $0x8] sm:$0xff]  ;;  %v230_v18 = vld [vmem:[%s770_s6 + $0x20] sm:$0xff]  ;;  %v556_v19 = vpack.c.bf16 %v229_v17, %v228_v16  ;;  %v327_v37 = vld [vmem:[%s772_s8 + $0x10] sm:$0xff] }
   0x9   :  { %v552_v15 = vpack.c.bf16 %v227_v14, %v226_v13  ;;  %v231_v20 = vld [vmem:[%s770_s6 + $0x28] sm:$0xff]  ;;  %v456_v22 = vld [vmem:[%s767_s3] ss:$0 sm:$0xff]  ;;  %s612_s6 = smov 92   ;;  %v328_v38 = vld [vmem:[%s772_s8 + $0x18] sm:$0xff] }
   0xa   :  { %551 = vmatpush3.bf16.msra.mxu1 %v548_v6  ;;  %499 = vmatmul.mubr.msk.f32.vlgmr.msra.gmra.mrb[0].mxu0 %vm47_vm1, %v40_v11  ;;  %v560_v21 = vpack.c.bf16 %v231_v20, %v230_v18  ;;  %v459_v23 = vld [vmem:[%s769_s5] ss:$0 sm:$0xff]  ;;  %v326_v35 = vld [vmem:[%s772_s8 + $0x8] sm:$0xff]  ;;  %v568_v39 = vpack.c.bf16 %v328_v38, %v327_v37 }
   0xb   :  { %553 = vmatprep.subr.bf16.mxu0 %v552_v15  ;;  %v325_v34 = vld [vmem:[%s772_s8] sm:$0xff] }
   0xc   :  { %555 = vmatpush3.bf16.msra.mxu0 %v552_v15  ;;  %v564_v36 = vpack.c.bf16 %v326_v35, %v325_v34  ;;  %v329_v40 = vld [vmem:[%s772_s8 + $0x20] sm:$0xf] }
   0xd   :  { %510 = vmatmul.mubr.msk.f32.vlgmr.msra.gmra.mrb[0].mxu1 %vm142_vm0, %v135_v12  ;;  %557 = vmatprep.subr.bf16.mxu0 %v556_v19  ;;  %v464_v41 = vld [vmem:[%s771_s7] ss:$0 sm:$0xff]  ;;  %s613_s7 = smov [#allocation2]  }
   0xe   :  { %565 = vmatprep.subr.bf16.mxu1 %v564_v36  ;;  %v468_v52 = vld [vmem:[%s773_s9] ss:$0 sm:$0xff]  ;;  %s445_s14 = sshll.u32 %s613_s7, 4  ;;  %s446_s14 = int_to_ptr.vmem [resolvable:$true] %s445_s14 }
   0xf   :  { %567 = vmatpush3.bf16.msra.mxu1 %v564_v36  ;;  %s588_s9 = scalar_lea.vmem %s446_s14, 256  ;;  %p593_p1 = scmp.lt.s32.totalorder %s446_s14, %s446_s14 }
  0x10   :  { %559 = vmatpush3.bf16.msra.mxu0 %v556_v19  ;;  %569 = vmatprep.subr.bf16.mxu1 %v568_v39  ;;  %p589_p0 = scmp.ne.s32.totalorder %s446_s14, %s588_s9  ;;  %p594_p2 = scmp.lt.s32.totalorder %s588_s9, %s588_s9 }
  0x11   :  { %561 = vmatprep.subr.bf16.mxu0 %v560_v21 }
  0x12   :  { %p595_p3 = por %p594_p2, %p593_p1 }
  0x13   :  { %571 = vmatpush3.bf16.msra.mxu1 %v568_v39 }
  0x14   :  { %563 = vmatpush3.bf16.msra.mxu0 %v560_v21  ;;  %535 = vmatprep.subr.msk.mxu1 %vm346_vm3, %v329_v40  ;;  %p596_p4 = pnand %p595_p3, %p589_p0 }
  0x17   :  { %536 = vmatpush3.msk.msra.mxu1 %vm346_vm3, %v329_v40 }
  0xdd   :  { %v500_v24 = vpop.f32.mrb[0].mxu0 }
  0xde   :  { %v120_v25 = vpop.f32.mrb[1].mxu0  ;;  %v126_v31 = vadd.f32 %v500_v24, %v456_v22 }
  0xdf   :  { %v121_v27 = vadd.f32 %v456_v22, %v120_v25 }
  0xe0   :  { %v511_v26 = vpop.f32.mrb[0].mxu1 }
  0xe1   :  { %v221_v28 = vadd.f32 %v511_v26, %v459_v23  ;;  %v215_v29 = vpop.f32.mrb[1].mxu1  ;;  %333 = vrot.lane.b32.xlu0 %v121_v27, %s612_s6 }
  0xe2   :  { %v216_v30 = vadd.f32 %v459_v23, %v215_v29 }
  0xe4   :  { %576 = vtanh.f32 %v216_v30 }
  0xe5   :  { %578 = vtanh.f32 %v221_v28  ;;  %335 = vrot.lane.b32.xlu0 %v126_v31, %s612_s6 }
  0xee   :  { %v577_v32 = vpop.eup %576 }
  0xef   :  { %v579_v33 = vpop.eup %578  ;;  %524 = vmatprep.mubr.msk.f32.mxu0 %vm233_vm2, %v577_v32 }
  0xf0   :  { %525 = vmatmul.mubr.msk.f32.vlgmr.msra.gmra.mrb[2].mxu0 %vm233_vm2, %v579_v33 }
 0x153   :  { %v334_v50 = vpop.permute.xlu0 %333 }
 0x157   :  { %v336_v51 = vpop.permute.xlu0 %335 }
 0x1c3   :  { %v526_v42 = vpop.f32.mrb[2].mxu0 }
 0x1c4   :  { %v312_v43 = vadd.f32 %v526_v42, %v126_v31  ;;  %v306_v44 = vpop.f32.mrb[3].mxu0 }
 0x1c5   :  { %v307_v45 = vadd.f32 %v306_v44, %v121_v27 }
 0x1c6   :  { %v322_v46 = vadd.f32 %v464_v41, %v312_v43 }
 0x1c7   :  { %v321_v47 = vadd.f32 %v464_v41, %v307_v45 }
 0x1c9   :  { %580 = vtanh.f32 %v321_v47 }
 0x1ca   :  { %582 = vtanh.f32 %v322_v46 }
 0x1d3   :  { %v581_v48 = vpop.eup %580 }
 0x1d4   :  { %v583_v49 = vpop.eup %582  ;;  %537 = vmatprep.mubr.msk.f32.mxu1 %vm339_vm4, %v581_v48 }
 0x1d5   :  { %538 = vmatmul.mubr.msk.f32.vlgmr.msra.gmra.mrb[2].mxu1 %vm339_vm4, %v583_v49 }
 0x2a8   :  { %v539_v53 = vpop.f32.mrb[2].mxu1 }
 0x2a9   :  { %v422_v54 = vadd.f32 %v539_v53, %v336_v51  ;;  %v416_v55 = vpop.f32.mrb[3].mxu1 }
 0x2aa   :  { %v417_v56 = vadd.f32 %v416_v55, %v334_v50 }
 0x2ab   :  { %v432_v57 = vadd.f32 %v468_v52, %v422_v54 }
 0x2ac   :  { %v431_v58 = vadd.f32 %v468_v52, %v417_v56 }
 0x2ad   :  { %584 = vtanh.f32 %v432_v57 }
 0x2ae   :  { %586 = vtanh.f32 %v431_v58 }
 0x2b7   :  { %v585_v59 = vpop.eup %584 }
 0x2b8   :  { %v587_v60 = vpop.eup %586  ;;  %v437_v61 = vsel %vm435_vm5, %v585_v59, %v336_v51 }
 0x2b9   :  { %v436_v62 = vsel %vm435_vm5, %v587_v60, %v334_v50  ;;  %439 = vst.msk [vmem:[#allocation2 + $0x8] sm:$0xff] %vm142_vm0, %v437_v61 }
 0x2ba   :  { %438 = vst.msk [vmem:[#allocation2] sm:$0xff] %vm142_vm0, %v436_v62 }
 0x2bb   :  { %599 = shalt.err (!%p596_p4)
}
 0x2bc   :  { %s600_s16 = scalar_lea.hbm %s774_s10, 256 }
 0x2bd   :  { %p601_p5 = scmp.ne.s32.totalorder %s774_s10, %s600_s16  ;;  %p604_p6 = scmp.lt.u32.totalorder %s600_s16, %s774_s10 }
 0x2bf   :  { %p606_p7 = pnand %p604_p6, %p601_p5 }
 0x2c1   :  { %609 = shalt.err (!%p606_p7)
}
 0x2c2   :  { %s614_s20 = smov 128   ;;  %s615_s21 = smov 8  }
 0x2c3   :  { %451 = dma.vmem_to_hbm [thread:$0]  %s446_s14, 256, %s774_s10, [#allocation3], %s614_s20, %s614_s20, %s615_s21  }
 0x2c4   :  { %610 = dma.done.wait [#allocation3], 256  }
 0x2c5   :  { %611 = vsyncadd [#allocation3], 4294967040 }
 0x2c6   :  { %455 = vsyncpa [#allocation3], 1 }

</bundles_post_ra>
